<compile_context>
chip_gen: v7x
topology: tpu7x:2x2x1
jax: 0.10.0
libtpu: 0.0.40
codegen_flags: <defaults>
</compile_context>

<pallas_src>
import functools
import math

import jax
import jax.numpy as jnp
from jax.experimental import pallas as pl
from jax.experimental.pallas import tpu as pltpu

_EPS = 1e-5
_LANES = 128


# -----------------------------------------------------------------------------
# Kernels
# -----------------------------------------------------------------------------

def _packed_kernel(x_ref, w_ref, m_ref, o_ref, *, inv_c):
    """Lane-packed path.

    x_ref : (TR, 128) tile; each packed row holds seg = 128//C original rows
            laid side-by-side along the lane axis (pure row-major view).
    w_ref : (1, 128) weight tiled seg times (f32, VMEM-resident).
    m_ref : (128, 128) block-diagonal 0/1 matrix with CxC blocks of ones.
            x @ M gives, at every lane, the sum over that lane's own C-wide
            segment — the segmented reduction AND its broadcast in one MXU op.
    """
    x = x_ref[...].astype(jnp.float32)                       # (TR, 128)
    m = m_ref[...]

    # Segmented sum / sum-of-squares on the idle MXU slot. HIGHEST => full-f32
    # matmul passes, so the reduction is as accurate as a VPU/XLU reduce.
    seg_sum = jnp.dot(x, m, preferred_element_type=jnp.float32,
                      precision=jax.lax.Precision.HIGHEST)
    seg_sumsq = jnp.dot(x * x, m, preferred_element_type=jnp.float32,
                        precision=jax.lax.Precision.HIGHEST)

    mean = seg_sum * inv_c
    # One-pass variance (no centered temporary); f32 accumulation keeps the
    # cancellation harmless for zero-ish-mean activations.
    var = seg_sumsq * inv_c - mean * mean
    inv = jax.lax.rsqrt(var + _EPS)                          # EUP slot
    o_ref[...] = (x * inv * w_ref[...]).astype(o_ref.dtype)


def _rowwise_kernel(x_ref, w_ref, o_ref):
    """Fallback path: whole normalized dim C on the lane axis."""
    x = x_ref[...].astype(jnp.float32)                       # (TR, C)
    mean = jnp.mean(x, axis=-1, keepdims=True)
    var = jnp.mean(x * x, axis=-1, keepdims=True) - mean * mean
    inv = jax.lax.rsqrt(var + _EPS)
    o_ref[...] = (x * inv * w_ref[...].astype(jnp.float32)).astype(o_ref.dtype)


# -----------------------------------------------------------------------------
# Tiling / budgets
# -----------------------------------------------------------------------------

def _vmem_budget():
    """(vmem_limit_bytes, target f32 working-set bytes per block) per chip."""
    try:
        kind = jax.devices()[0].device_kind.lower()
    except Exception:
        kind = ""
    if "v5" in kind or "v6" in kind:
        # 128 MiB physical VMEM; raise the 16/32 MiB scoped default so bigger
        # blocks amortize the ~0.35 us/step pipeline overhead.
        return 96 * 1024 * 1024, 8 * 1024 * 1024
    # v7x (64 MiB physical, 2 TCs) and unknown chips: conservative blocks so
    # in/out double-buffers + f32 temporaries stay comfortably resident.
    return 40 * 1024 * 1024, 2 * 1024 * 1024


def _choose_row_tile(n_rows, n_cols, itemsize, target_block_bytes, min_steps=4):
    """Row-tile size with lane-padding-aware VMEM accounting.

    - effective bytes/row = round_up(cols, 128) * 4 (f32 working set), not
      cols * itemsize, so narrow-C inputs don't silently blow the VMEM budget.
    - rows aligned to the dtype's sublane packing (8 f32 / 16 bf16 / 32 int8).
    - tile capped so big tensors get >= min_steps grid steps: keeps BlockSpec
      double-buffering (DMA/compute overlap) alive and gives both v7x
      TensorCores work under dimension_semantics=("parallel",).
    """
    sublane = max(8, 32 // max(1, itemsize))
    padded_cols = pl.cdiv(n_cols, _LANES) * _LANES
    bytes_per_row = padded_cols * 4
    rows = max(sublane, target_block_bytes // bytes_per_row)
    cap = n_rows // min_steps
    if cap >= sublane:
        rows = min(rows, cap)
    rows = max(sublane, (rows // sublane) * sublane)
    return n_rows if rows >= n_rows else rows


# -----------------------------------------------------------------------------
# Wrapper
# -----------------------------------------------------------------------------

def bias_free_layernorm(x, weight):
    """x: (..., C); weight: (C,). Returns x / sqrt(var(x,-1)+1e-5) * weight."""
    orig_shape = x.shape
    *lead, C = x.shape
    assert weight.shape == (C,)
    R = math.prod(lead) if lead else 1
    x2 = x.reshape(R, C)

    vmem_limit, target_block = _vmem_budget()
    cparams = pltpu.CompilerParams(
        dimension_semantics=("parallel",),      # megacore / 2-TC split
        vmem_limit_bytes=vmem_limit,
    )

    seg = _LANES // C if (C < _LANES and _LANES % C == 0) else 1
    if seg > 1 and R % seg == 0:
        # ---- lane-packed path: (R, C) -> (R/seg, 128), pure view ------------
        Rp, Cp = R // seg, _LANES
        xp = x2.reshape(Rp, Cp)
        wp = jnp.tile(weight.astype(jnp.float32), seg).reshape(1, Cp)
        li = jax.lax.broadcasted_iota(jnp.int32, (Cp, Cp), 0)
        lj = jax.lax.broadcasted_iota(jnp.int32, (Cp, Cp), 1)
        m = (li // C == lj // C).astype(jnp.float32)     # block-diagonal ones

        tr = _choose_row_tile(Rp, Cp, x.dtype.itemsize, target_block)
        try:
            out = pl.pallas_call(
                functools.partial(_packed_kernel, inv_c=1.0 / C),
                out_shape=jax.ShapeDtypeStruct((Rp, Cp), x.dtype),
                grid_spec=pltpu.PrefetchScalarGridSpec(
                    num_scalar_prefetch=0,
                    grid=(pl.cdiv(Rp, tr),),
                    in_specs=[
                        pl.BlockSpec((tr, Cp), lambda i: (i, 0)),   # x row tile
                        pl.BlockSpec((1, Cp), lambda i: (0, 0)),    # weight
                        pl.BlockSpec((Cp, Cp), lambda i: (0, 0)),   # block-diag M
                    ],
                    out_specs=pl.BlockSpec((tr, Cp), lambda i: (i, 0)),
                ),
                compiler_params=cparams,
            )(xp, wp, m)
            return out.reshape(orig_shape)
        except Exception:
            # Graceful degradation: if the packed/MXU path fails to lower on
            # some build, fall through to the plain row-wise kernel below.
            pass

    # ---- fallback: whole row on the lane axis --------------------------------
    w2 = weight.reshape(1, C)
    tr = _choose_row_tile(R, C, x.dtype.itemsize, target_block)
    out = pl.pallas_call(
        _rowwise_kernel,
        out_shape=jax.ShapeDtypeStruct((R, C), x.dtype),
        grid_spec=pltpu.PrefetchScalarGridSpec(
            num_scalar_prefetch=0,
            grid=(pl.cdiv(R, tr),),
            in_specs=[
                pl.BlockSpec((tr, C), lambda i: (i, 0)),
                pl.BlockSpec((1, C), lambda i: (0, 0)),
            ],
            out_specs=pl.BlockSpec((tr, C), lambda i: (i, 0)),
        ),
        compiler_params=cparams,
    )(x2, w2)
    return out.reshape(orig_shape)


# -----------------------------------------------------------------------------
# Reference + demo
# -----------------------------------------------------------------------------

def _reference(x, w):
    xf = x.astype(jnp.float32)
    var = jnp.var(xf, axis=-1, keepdims=True)        # unbiased=False
    return (xf / jnp.sqrt(var + _EPS) * w).astype(x.dtype)


if __name__ == "__main__":
    # Module config: normalized_shape = 32 (last dim); x shaped (batch, seq, C).
    B, N, C = 2, 64, 32
    key = jax.random.PRNGKey(0)
    kx, kw, kx2, kw2 = jax.random.split(key, 4)

    # Lane-packed path (C=32 divides 128, R divisible by 128//C).
    x = jax.random.normal(kx, (B, N, C), dtype=jnp.float32)
    w = 1.0 + 0.1 * jax.random.normal(kw, (C,), dtype=jnp.float32)
    out = jax.block_until_ready(bias_free_layernorm(x, w))
    ref = _reference(x, w)
    assert out.shape == x.shape
    assert jnp.allclose(out, ref, atol=2e-5, rtol=1e-5), "packed path mismatch"

    # Row-wise fallback path (C=48 does not divide 128).
    x2 = jax.random.normal(kx2, (2, 7, 48), dtype=jnp.float32)
    w2 = 1.0 + 0.1 * jax.random.normal(kw2, (48,), dtype=jnp.float32)
    out2 = jax.block_until_ready(bias_free_layernorm(x2, w2))
    ref2 = _reference(x2, w2)
    assert jnp.allclose(out2, ref2, atol=2e-5, rtol=1e-5), "row-wise path mismatch"

    print("KERNEL_OK")
</pallas_src>

<mosaic_0001>
module attributes {stable_mosaic.version = 11 : i64} {
  func.func @_packed_kernel(%arg0: i32, %arg1: memref<8x128xf32, #tpu.memory_space<vmem>>, %arg2: memref<1x128xf32, #tpu.memory_space<vmem>>, %arg3: memref<128x128xf32, #tpu.memory_space<vmem>>, %arg4: memref<8x128xf32, #tpu.memory_space<vmem>>) attributes {dimension_semantics = [#tpu.dimension_semantics<parallel>], iteration_bounds = array<i64: 4>, scalar_prefetch = 0 : i64, scratch_operands = 0 : i64, tpu.core_type = #tpu.core_type<tc>, window_params = [{transform_indices = @transform_0, window_bounds = array<i64: 8, 128>}, {pipeline_mode = #tpu.pipeline_mode<synchronous>, transform_indices = @transform_1, window_bounds = array<i64: 1, 128>}, {pipeline_mode = #tpu.pipeline_mode<synchronous>, transform_indices = @transform_2, window_bounds = array<i64: 128, 128>}, {transform_indices = @transform_3, window_bounds = array<i64: 8, 128>}]} {
    %c0 = arith.constant 0 : index
    %c0_0 = arith.constant 0 : index
    %0 = vector.load %arg1[%c0, %c0_0] : memref<8x128xf32, #tpu.memory_space<vmem>>, vector<8x128xf32>
    %c0_1 = arith.constant 0 : index
    %c0_2 = arith.constant 0 : index
    %1 = vector.load %arg3[%c0_1, %c0_2] : memref<128x128xf32, #tpu.memory_space<vmem>>, vector<128x128xf32>
    %cst = arith.constant dense<0.000000e+00> : vector<8x128xf32>
    %2 = tpu.matmul %0, %1, %cst {dimension_numbers = #tpu.dot_dimension_numbers<[1], [0], [0], [1], [0, 0, 1, 1], [], []>, precision = #tpu.contract_precision<fp32>} : vector<8x128xf32>, vector<128x128xf32>, vector<8x128xf32> -> vector<8x128xf32>
    %3 = arith.mulf %0, %0 : vector<8x128xf32>
    %cst_3 = arith.constant dense<0.000000e+00> : vector<8x128xf32>
    %4 = tpu.matmul %3, %1, %cst_3 {dimension_numbers = #tpu.dot_dimension_numbers<[1], [0], [0], [1], [0, 0, 1, 1], [], []>, precision = #tpu.contract_precision<fp32>} : vector<8x128xf32>, vector<128x128xf32>, vector<8x128xf32> -> vector<8x128xf32>
    %cst_4 = arith.constant 3.125000e-02 : f32
    %5 = vector.broadcast %cst_4 : f32 to vector<8x128xf32>
    %6 = arith.mulf %2, %5 : vector<8x128xf32>
    %cst_5 = arith.constant 3.125000e-02 : f32
    %7 = vector.broadcast %cst_5 : f32 to vector<8x128xf32>
    %8 = arith.mulf %4, %7 : vector<8x128xf32>
    %9 = arith.mulf %6, %6 : vector<8x128xf32>
    %10 = arith.subf %8, %9 : vector<8x128xf32>
    %cst_6 = arith.constant 9.99999974E-6 : f32
    %11 = vector.broadcast %cst_6 : f32 to vector<8x128xf32>
    %12 = arith.addf %10, %11 : vector<8x128xf32>
    %13 = math.rsqrt %12 : vector<8x128xf32>
    %14 = arith.mulf %0, %13 : vector<8x128xf32>
    %c0_7 = arith.constant 0 : index
    %c0_8 = arith.constant 0 : index
    %15 = vector.load %arg2[%c0_7, %c0_8] : memref<1x128xf32, #tpu.memory_space<vmem>>, vector<1x128xf32>
    %16 = vector.broadcast %15 : vector<1x128xf32> to vector<8x128xf32>
    %17 = arith.mulf %14, %16 : vector<8x128xf32>
    %c0_9 = arith.constant 0 : index
    %c0_10 = arith.constant 0 : index
    %18 = vector.load %arg4[%c0_9, %c0_10] : memref<8x128xf32, #tpu.memory_space<vmem>>, vector<8x128xf32>
    tpu.vector_store %arg4[%c0_9, %c0_10], %17 {strides = array<i32>} : memref<8x128xf32, #tpu.memory_space<vmem>>, vector<8x128xf32>,
    return
  }
  func.func @transform_0(%arg0: i32) -> (i32, i32) {
    %c0_i32 = arith.constant 0 : i32
    %c0_i32_0 = arith.constant 0 : i32
    return %arg0, %c0_i32 : i32, i32
  }
  func.func @transform_1(%arg0: i32) -> (i32, i32) {
    %c0_i32 = arith.constant 0 : i32
    %c0_i32_0 = arith.constant 0 : i32
    %c0_i32_1 = arith.constant 0 : i32
    return %c0_i32, %c0_i32_0 : i32, i32
  }
  func.func @transform_2(%arg0: i32) -> (i32, i32) {
    %c0_i32 = arith.constant 0 : i32
    %c0_i32_0 = arith.constant 0 : i32
    %c0_i32_1 = arith.constant 0 : i32
    return %c0_i32, %c0_i32_0 : i32, i32
  }
  func.func @transform_3(%arg0: i32) -> (i32, i32) {
    %c0_i32 = arith.constant 0 : i32
    %c0_i32_0 = arith.constant 0 : i32
    return %arg0, %c0_i32 : i32, i32
  }
}

module attributes {stable_mosaic.version = 11 : i64} {
  func.func @_rowwise_kernel(%arg0: i32, %arg1: memref<32x32xf32, #tpu.memory_space<vmem>>, %arg2: memref<1x32xf32, #tpu.memory_space<vmem>>, %arg3: memref<32x32xf32, #tpu.memory_space<vmem>>) attributes {dimension_semantics = [#tpu.dimension_semantics<parallel>], iteration_bounds = array<i64: 4>, scalar_prefetch = 0 : i64, scratch_operands = 0 : i64, tpu.core_type = #tpu.core_type<tc>, window_params = [{transform_indices = @transform_0, window_bounds = array<i64: 32, 32>}, {pipeline_mode = #tpu.pipeline_mode<synchronous>, transform_indices = @transform_1, window_bounds = array<i64: 1, 32>}, {transform_indices = @transform_2, window_bounds = array<i64: 32, 32>}]} {
    %c0 = arith.constant 0 : index
    %c0_0 = arith.constant 0 : index
    %0 = vector.load %arg1[%c0, %c0_0] : memref<32x32xf32, #tpu.memory_space<vmem>>, vector<32x32xf32>
    %cst = arith.constant dense<0.000000e+00> : vector<32xf32>
    %1 = vector.multi_reduction <add>, %0, %cst [1] : vector<32x32xf32> to vector<32xf32>
    %2 = vector.shape_cast %1 : vector<32xf32> to vector<32x1xf32>
    %cst_1 = arith.constant 3.200000e+01 : f32
    %3 = vector.broadcast %cst_1 : f32 to vector<32x1xf32>
    %4 = arith.divf %2, %3 : vector<32x1xf32>
    %5 = arith.mulf %0, %0 : vector<32x32xf32>
    %cst_2 = arith.constant dense<0.000000e+00> : vector<32xf32>
    %6 = vector.multi_reduction <add>, %5, %cst_2 [1] : vector<32x32xf32> to vector<32xf32>
    %7 = vector.shape_cast %6 : vector<32xf32> to vector<32x1xf32>
    %cst_3 = arith.constant 3.200000e+01 : f32
    %8 = vector.broadcast %cst_3 : f32 to vector<32x1xf32>
    %9 = arith.divf %7, %8 : vector<32x1xf32>
    %10 = arith.mulf %4, %4 : vector<32x1xf32>
    %11 = arith.subf %9, %10 : vector<32x1xf32>
    %cst_4 = arith.constant 9.99999974E-6 : f32
    %12 = vector.broadcast %cst_4 : f32 to vector<32x1xf32>
    %13 = arith.addf %11, %12 : vector<32x1xf32>
    %14 = math.rsqrt %13 : vector<32x1xf32>
    %15 = vector.broadcast %14 : vector<32x1xf32> to vector<32x32xf32>
    %16 = arith.mulf %0, %15 : vector<32x32xf32>
    %c0_5 = arith.constant 0 : index
    %c0_6 = arith.constant 0 : index
    %17 = vector.load %arg2[%c0_5, %c0_6] : memref<1x32xf32, #tpu.memory_space<vmem>>, vector<1x32xf32>
    %18 = vector.broadcast %17 : vector<1x32xf32> to vector<32x32xf32>
    %19 = arith.mulf %16, %18 : vector<32x32xf32>
    %c0_7 = arith.constant 0 : index
    %c0_8 = arith.constant 0 : index
    %20 = vector.load %arg3[%c0_7, %c0_8] : memref<32x32xf32, #tpu.memory_space<vmem>>, vector<32x32xf32>
    tpu.vector_store %arg3[%c0_7, %c0_8], %19 {strides = array<i32>} : memref<32x32xf32, #tpu.memory_space<vmem>>, vector<32x32xf32>,
    return
  }
  func.func @transform_0(%arg0: i32) -> (i32, i32) {
    %c0_i32 = arith.constant 0 : i32
    %c0_i32_0 = arith.constant 0 : i32
    return %arg0, %c0_i32 : i32, i32
  }
  func.func @transform_1(%arg0: i32) -> (i32, i32) {
    %c0_i32 = arith.constant 0 : i32
    %c0_i32_0 = arith.constant 0 : i32
    %c0_i32_1 = arith.constant 0 : i32
    return %c0_i32, %c0_i32_0 : i32, i32
  }
  func.func @transform_2(%arg0: i32) -> (i32, i32) {
    %c0_i32 = arith.constant 0 : i32
    %c0_i32_0 = arith.constant 0 : i32
    return %arg0, %c0_i32 : i32, i32
  }
}

</mosaic_0001>

<bundles_post_ra>
// kernel: tpu_custom_call.1
= control target key start
LH: loop header
LB: loop body
LE: loop exit
PB: predicated region body
PF: predicated region fallthrough
CT: control target
= control target key end

     0   :  { %8 = vsyncpa [#allocation3], 0  ;;  %s3337_s0 = inlined_call_operand.hbm [shape: f32[32,128], index: 0, kind: input, shape index: {}]   ;;  %s3338_s1 = inlined_call_operand.vmem [shape: f32[1,128], index: 1, kind: input, shape index: {}]   ;;  %s3339_s2 = inlined_call_operand.hbm [shape: f32[128,128], index: 2, kind: input, shape index: {}]   ;;  %s3340_s3 = inlined_call_operand.hbm [shape: f32[32,128], index: 3, kind: output, shape index: {}]  }
   0x1   :  { %10 = vsyncpa [#allocation3 + $0x1], 0 }
   0x2   :  { %11 = vsyncpa [#allocation6], 0 }
   0x3   :  { %12 = vsyncpa [#allocation4], 0 }
   0x4   :  { %14 = vsyncpa [#allocation4 + $0x1], 0  ;;  %s2780_s12 = smov 0   ;;  %s2782_s13 = smov 0  }
   0x5   :  { %s2784_s14 = smov 0   ;;  %s2786_s15 = smov 0  }
   0x6 LB: > { %s2801_s16 = sadd.s32 4294967295, %s2750_s15   ;;  %s1611_s17 = sadd.s32 4294967294, %s2750_s15   ;;  %s2750_s15 = sphi %s2786_s15, %s3365_s15   ;;  %s2746_s14 = sphi %s2784_s14, %s3364_s14   ;;  %s2742_s13 = sphi %s2782_s13, %s3363_s13   ;;  %s2738_s12 = sphi %s2780_s12, %s3362_s12  }
   0x7   : > { %p40_p0 = scmp.ne.s32.totalorder %s2742_s13, %s2738_s12  ;;  %p3341_p1 = scmp.eq.s32.totalorder %s2801_s16, 0 }
   0x8   : > { %p112_p3 = scmp.eq.s32.totalorder %s1611_s17, 3  ;;  %p1612_p5 = scmp.ge.s32.totalorder %s2750_s15, 1 }
   0x9   : > { %p2810_p4 = por %p3341_p1, %p40_p0  ;;  %p119_p7 = scmp.lt.s32.totalorder %s2750_s15, 5 }
   0xa   : > { %p2815_p6 = por %p112_p3, %p40_p0  ;;  %s2752_s21 = smov [#allocation5]  }
   0xb   : > { %s3347_s18 = scalar_select %p2810_p4, 1, 0 }
   0xc   : > { %s3348_s19 = scalar_select %p2815_p6, 1, 0 }
   0xd   : > { %p2820_p8 = pnand %p1612_p5, %p119_p7  ;;  %s134_s22 = sshll.u32 %s2752_s21, 4  ;;  %s135_s22 = int_to_ptr.vmem [resolvable:$true] %s134_s22 }
   0xe   : > { %s2833_s24 = sadd.s32 1, %s2750_s15   ;;  %s27_s25 = sadd.s32 1, %s2746_s14 }
   0xf   : > { %s3349_s20 = scalar_select %p2820_p8, 1, 0 }
  0x10   : > { %p2566_p9 = pneg %p2820_p8  ;;  %s24_s26 = ssub.s32 %s2750_s15, %s2833_s24 }
  0x11   : > { %s2622_s29 = scalar_lea.hbm %s3339_s2, 2048 }
  0x12   : > { %p2828_p10 = pnand %p2566_p9, %p3341_p1  ;;  %p2623_p11 = scmp.ne.s32.totalorder %s3339_s2, %s2622_s29 }
  0x13   : > { %p2629_p3 = scmp.lt.u32.totalorder %s2622_s29, %s3339_s2 }
  0x14   : > { %p2624_p12 = pneg %p2828_p10 }
  0x16   : > { %p2625_p13 = pnand %p2624_p12, %p2623_p11 }
  0x18   : > { %p2626_p0 = pneg %p2625_p13 }
  0x1a   : > { %p2631_p5 = pnand %p2629_p3, %p2626_p0 }
  0x1c   : > { %2634 = shalt.err (!%p2631_p5)
}
  0x1d   : > { %s2635_s7 = scalar_lea.vmem %s135_s22, 2048  ;;  %p2643_p2 = scmp.lt.s32.totalorder %s135_s22, %s135_s22 }
  0x1e   : > { %p2636_p7 = scmp.ne.s32.totalorder %s135_s22, %s2635_s7  ;;  %p2644_p6 = scmp.lt.s32.totalorder %s2635_s7, %s2635_s7 }
  0x20   : > { %p2638_p9 = pnand %p2636_p7, %p2624_p12  ;;  %p2645_p4 = por %p2644_p6, %p2643_p2 }
  0x22   : > { %p2639_p1 = pneg %p2638_p9 }
  0x24   : > { %p2646_p8 = pnand %p2645_p4, %p2639_p1 }
  0x26   : > { %2649 = shalt.err (!%p2646_p8)
}
  0x27   : > { %s2753_s8 = smov 128   ;;  %s2754_s9 = smov 8  }
  0x28   : > { %2569 = dma.hbm_to_vmem [thread:$0]  (!%p2828_p10), %s3339_s2, 2048, %s135_s22, [#allocation6], %s2753_s8, %s2753_s8, %s2754_s9  }
  0x29   : > { %p25_p11 = scmp.eq.s32.totalorder %s24_s26, 0  ;;  %p34_p2 = scmp.ne.s32.totalorder %s2746_s14, %s2742_s13 }
  0x2a   : > { %p35_p1 = scmp.eq.s32.totalorder %s2750_s15, 0  ;;  %p2579_p4 = scmp.lt.s32.totalorder %s2750_s15, 4 }
  0x2b   : > { %s2859_s17 = scalar_select %p25_p11, %s2746_s14, %s27_s25  }
  0x2c   : > { %p36_p6 = por %p35_p1, %p34_p2  ;;  %p3351_p8 = scmp.eq.s32.totalorder %s2801_s16, 3 }
  0x2d   : > { %s148_s27 = sand.u32 1, %s2746_s14   ;;  %s1616_s28 = sshll.u32 %s2750_s15, 7 }
  0x2e   : > { %p2863_p12 = por %p3351_p8, %p34_p2  ;;  %s1615_s29 = sshll.u32 %s148_s27, 3 }
  0x2f   : > { %s2872_s4 = scalar_lea.hbm %s3337_s0, %s1616_s28  ;;  %s152_s22 = scalar_lea.vmem [#allocation2], %s1615_s29 }
  0x30   : > { %s159_s25 = sshll.u32 %s152_s22, 4  ;;  %p2874_p10 = pnand %p2579_p4, %p36_p6  ;;  %s2878_s25 = int_to_ptr.vmem [resolvable:$true] %s159_s25 }
  0x31   : > { %s149_s5 = scalar_lea.sflag [#allocation3], %s148_s27  ;;  %s2650_s6 = scalar_lea.hbm %s2872_s4, 128 }
  0x32   : > { %p2651_p13 = scmp.ne.s32.totalorder %s2872_s4, %s2650_s6  ;;  %p2652_p0 = pneg %p2874_p10 }
  0x33   : > { %s2655_s9 = scalar_lea.hbm %s3337_s0, 512  ;;  %p2656_p7 = scmp.lt.u32.totalorder %s2872_s4, %s3337_s0 }
  0x34   : > { %p2653_p3 = pnand %p2652_p0, %p2651_p13  ;;  %p2657_p9 = scmp.lt.u32.totalorder %s2655_s9, %s2650_s6 }
  0x35   : > { %p2659_p2 = scmp.lt.u32.totalorder %s2650_s6, %s2872_s4 }
  0x36   : > { %p2654_p5 = pneg %p2653_p3  ;;  %p2658_p11 = por %p2657_p9, %p2656_p7 }
  0x38   : > { %p2660_p1 = por %p2659_p2, %p2658_p11 }
  0x3a   : > { %p2661_p4 = pnand %p2660_p1, %p2654_p5 }
  0x3c   : > { %2664 = shalt.err (!%p2661_p4)
}
  0x3d   : > { %s2665_s27 = scalar_lea.vmem %s2878_s25, 128  ;;  %s2755_s28 = smov [#allocation2]  }
  0x3e   : > { %p2666_p6 = scmp.ne.s32.totalorder %s2878_s25, %s2665_s27  ;;  %s2670_s29 = sshll.u32 %s2755_s28, 4  ;;  %s2671_s29 = int_to_ptr.vmem [resolvable:$false] %s2670_s29 }
  0x3f   : > { %s2672_s23 = scalar_lea.vmem %s2671_s29, 256  ;;  %p2673_p3 = scmp.lt.s32.totalorder %s2878_s25, %s2671_s29 }
  0x40   : > { %p2668_p8 = pnand %p2666_p6, %p2652_p0  ;;  %p2674_p7 = scmp.lt.s32.totalorder %s2672_s23, %s2665_s27 }
  0x42   : > { %p2669_p13 = pneg %p2668_p8  ;;  %p2675_p9 = por %p2674_p7, %p2673_p3 }
  0x44   : > { %p2676_p11 = pnand %p2675_p9, %p2669_p13 }
  0x46   : > { %2679 = shalt.err (!%p2676_p11)
}
  0x47   : > { %2573 = dma.hbm_to_vmem [thread:$0]  (!%p2874_p10), %s2872_s4, 128, %s2878_s25, %s149_s5  }
  0x48   : > { %p3354_p5 = scmp.ne.s32.totalorder %s3349_s20, 0 }
  0x49   : > { %s2908_s30 = sand.u32 (!%p3354_p5), 1, %s2742_s13   ;;  %p3355_p0 = scmp.ne.s32.totalorder (!%p3354_p5), %s3347_s18, 0 }
  0x4a   : > { %168 = sbr.rel (%p3354_p5) target bundleno = 530 (0x212), region = 32  ;;  %s1618_s22 = sshll.u32 (!%p3354_p5), %s2908_s30, 3 }
  0x4b   : > { %s171_s6 = scalar_lea.sflag (!%p3354_p5), [#allocation3], %s2908_s30  ;;  %s2914_s7 = scalar_lea.vmem (!%p3354_p5), [#allocation2], %s1618_s22 }
  0x51   : > { %2725 = dma.done.wait (%p3355_p0), %s171_s6, 128  }
  0x52   : > { %2727 = vsyncadd (%p3355_p0), %s171_s6, 4294967168  ;;  %p3356_p10 = scmp.eq.s32.totalorder %s2801_s16, 0 }
  0x54   : > { %2729 = dma.done.wait (%p3356_p10), [#allocation6], 2048   ;;  %p3357_p2 = pmov %p3356_p10 }
  0x55   : > { %v2756_v0 = vmov 0.0|0.0   ;;  %vm2757_vm0 = vmmov 0   ;;  %v2758_v1 = vmov 0.0   ;;  %v202_v2 = vld [vmem:[#allocation5] sm:$0xff]  ;;  %v203_v3 = vld [vmem:[#allocation5 + $0x8] sm:$0xff]  ;;  %v204_v4 = vld [vmem:[#allocation5 + $0x10] sm:$0xff] }
  0x56   : > { %2731 = vsyncadd (%p3357_p2), [#allocation6], 4294965248  ;;  %2250 = vmatprep.subr.bf16.mxu0 %v2756_v0  ;;  %2394 = vmatprep.subr.bf16.mxu1 %v2756_v0  ;;  %v219_v5 = vand.u32 4294901760, %v202_v2  ;;  %v222_v6 = vand.u32 4294901760, %v203_v3  ;;  %v205_v7 = vld [vmem:[#allocation5 + $0x18] sm:$0xff]  ;;  %v225_v8 = vand.u32 4294901760, %v204_v4 }
  0x57   : > { %1862 = vmatprep.mubr.msk.f32.mxu0 %vm2757_vm0, %v2758_v1  ;;  %2072 = vmatprep.mubr.msk.f32.mxu1 %vm2757_vm0, %v2758_v1  ;;  %v228_v9 = vand.u32 4294901760, %v205_v7  ;;  %v2930_v10 = vld [vmem:[#allocation5 + $0x20] sm:$0xff]  ;;  %v2932_v11 = vld [vmem:[#allocation5 + $0x28] sm:$0xff]  ;;  %v2944_v16 = vld [vmem:[#allocation5 + $0x30] sm:$0xff]  ;;  %s1623_s4 = sshll.u32 %s2801_s16, 7  ;;  %s200_s25 = scalar_lea.vmem [#allocation7], %s1618_s22 }
  0x58   : > { %v2934_v12 = vpack.c.bf16 %v222_v6, %v219_v5  ;;  %v231_v14 = vand.u32 4294901760, %v2930_v10  ;;  %v234_v15 = vand.u32 4294901760, %v2932_v11  ;;  %v2946_v17 = vld [vmem:[#allocation5 + $0x38] sm:$0xff]  ;;  %v237_v20 = vand.u32 4294901760, %v2944_v16  ;;  %v210_v22 = vld [vmem:[#allocation5 + $0x40] sm:$0xff]  ;;  %v211_v23 = vld [vmem:[#allocation5 + $0x48] sm:$0xff]  ;;  %s3294_s9 = scalar_lea.hbm %s3340_s3, %s1623_s4 }
  0x59   : > { %v2938_v13 = vpack.c.bf16 %v228_v9, %v225_v8  ;;  %v2949_v18 = vld [vmem:[%s2914_s7] sm:$0xff]  ;;  %v240_v21 = vand.u32 4294901760, %v2946_v17  ;;  %v214_v28 = vld [vmem:[#allocation5 + $0x60] sm:$0xff]  ;;  %v243_v30 = vand.u32 4294901760, %v210_v22  ;;  %v246_v31 = vand.u32 4294901760, %v211_v23  ;;  %v215_v32 = vld [vmem:[#allocation5 + $0x68] sm:$0xff] }
  0x5a   : > { %2252 = vmatpush3.bf16.msra.mxu0 %v2934_v12  ;;  %2396 = vmatpush3.bf16.msra.mxu1 %v2934_v12  ;;  %v2953_v19 = vpack.c.bf16 %v234_v15, %v231_v14  ;;  %v2960_v24 = vand.u32 4294901760, %v2949_v18  ;;  %v859_v25 = vmul.f32 %v2949_v18, %v2949_v18  ;;  %v212_v26 = vld [vmem:[#allocation5 + $0x50] sm:$0xff]  ;;  %v213_v27 = vld [vmem:[#allocation5 + $0x58] sm:$0xff]  ;;  %v2968_v35 = vsub.f32 %v202_v2, %v219_v5  ;;  %s1531_s26 = sshll.u32 %s200_s25, 4  ;;  %s1518_s10 = scalar_lea.sflag [#allocation4], %s2908_s30  ;;  %s3296_s26 = int_to_ptr.vmem [resolvable:$true] %s1531_s26 }
  0x5b   : > { %2253 = vmatprep.subr.bf16.mxu0 %v2756_v0  ;;  %2397 = vmatprep.subr.bf16.mxu1 %v2756_v0  ;;  %v2966_v29 = vpack.c.bf16 %v240_v21, %v237_v20  ;;  %v216_v33 = vld [vmem:[#allocation5 + $0x70] sm:$0xff]  ;;  %v217_v34 = vld [vmem:[#allocation5 + $0x78] sm:$0xff]  ;;  %v2976_v37 = vsub.f32 %v203_v3, %v222_v6  ;;  %v2978_v38 = vsub.f32 %v204_v4, %v225_v8  ;;  %v249_v39 = vand.u32 4294901760, %v212_v26  ;;  %s2680_s11 = scalar_lea.vmem %s3296_s26, 128  ;;  %s2759_s16 = smov [#allocation7]  }
  0x5c   : > { %v2974_v36 = vsub.f32 %v2949_v18, %v2960_v24  ;;  %v252_v40 = vand.u32 4294901760, %v213_v27  ;;  %v2980_v41 = vand.u32 4294901760, %v859_v25  ;;  %v255_v42 = vand.u32 4294901760, %v214_v28  ;;  %p2681_p1 = scmp.ne.s32.totalorder %s3296_s26, %s2680_s11  ;;  %s2684_s27 = sshll.u32 %s2759_s16, 4  ;;  %s2685_s27 = int_to_ptr.vmem [resolvable:$false] %s2684_s27 }
  0x5d   : > { %v258_v43 = vand.u32 4294901760, %v215_v32  ;;  %v261_v44 = vand.u32 4294901760, %v216_v33  ;;  %v264_v45 = vand.u32 4294901760, %v217_v34  ;;  %v2984_v46 = vpack.c.bf16 %v246_v31, %v243_v30  ;;  %s2686_s28 = scalar_lea.vmem %s2685_s27, 256  ;;  %p2687_p8 = scmp.lt.s32.totalorder %s3296_s26, %s2685_s27 }
  0x5e   : > { %2255 = vmatpush3.bf16.msra.mxu0 %v2938_v13  ;;  %2399 = vmatpush3.bf16.msra.mxu1 %v2938_v13  ;;  %v312_v47 = vand.u32 4294901760, %v2968_v35  ;;  %v3345_v48 = vand.u32 4294901760, %v2974_v36  ;;  %v319_v49 = vand.u32 4294901760, %v2976_v37  ;;  %v326_v50 = vand.u32 4294901760, %v2978_v38  ;;  %p2682_p4 = pnand %p2681_p1, %p2863_p12  ;;  %p2688_p13 = scmp.lt.s32.totalorder %s2686_s28, %s2680_s11 }
  0x5f   : > { %2256 = vmatprep.subr.bf16.mxu0 %v2756_v0  ;;  %2400 = vmatprep.subr.bf16.mxu1 %v2756_v0  ;;  %v2992_v51 = vsub.f32 %v205_v7, %v228_v9  ;;  %v2995_v52 = vsub.f32 %v859_v25, %v2980_v41  ;;  %v2997_v53 = vpack.c.bf16 %v252_v40, %v249_v39 }
  0x60   : > { %v2999_v54 = vpack.c.bf16 %v258_v43, %v255_v42  ;;  %v3001_v55 = vpack.c.bf16 %v264_v45, %v261_v44  ;;  %v313_v56 = vsub.f32 %v2968_v35, %v312_v47  ;;  %v3007_v57 = vsub.f32 %v2930_v10, %v231_v14  ;;  %p2683_p6 = pneg %p2682_p4  ;;  %p2689_p3 = por %p2688_p13, %p2687_p8 }
  0x61   : > { %v3010_v58 = vsub.f32 %v2932_v11, %v234_v15  ;;  %v302_v59 = vsub.f32 %v2974_v36, %v3345_v48  ;;  %v320_v60 = vsub.f32 %v2976_v37, %v319_v49  ;;  %v3019_v61 = vsub.f32 %v2978_v38, %v326_v50 }
  0x62   : > { %2258 = vmatpush3.bf16.msra.mxu0 %v2953_v19  ;;  %2402 = vmatpush3.bf16.msra.mxu1 %v2953_v19  ;;  %v333_v62 = vand.u32 4294901760, %v2992_v51  ;;  %v3344_v63 = vand.u32 4294901760, %v2995_v52  ;;  %v3024_v2 = vsub.f32 %v2944_v16, %v237_v20  ;;  %v3027_v3 = vsub.f32 %v2946_v17, %v240_v21  ;;  %p2690_p7 = pnand %p2689_p3, %p2683_p6 }
  0x63   : > { %2259 = vmatprep.subr.bf16.mxu0 %v2756_v0  ;;  %2403 = vmatprep.subr.bf16.mxu1 %v2756_v0  ;;  %v3029_v4 = vsub.f32 %v210_v22, %v243_v30  ;;  %v3031_v5 = vsub.f32 %v211_v23, %v246_v31  ;;  %v3033_v6 = vsub.f32 %v212_v26, %v249_v39  ;;  %v340_v9 = vand.u32 4294901760, %v3007_v57 }
  0x64   : > { %v3035_v7 = vsub.f32 %v213_v27, %v252_v40  ;;  %v3037_v8 = vsub.f32 %v214_v28, %v255_v42  ;;  %v3042_v10 = vsub.f32 %v215_v32, %v258_v43  ;;  %v3044_v11 = vsub.f32 %v216_v33, %v261_v44 }
  0x65   : > { %v3046_v14 = vsub.f32 %v217_v34, %v264_v45  ;;  %v314_v15 = vand.u32 4294901760, %v313_v56  ;;  %v321_v16 = vand.u32 4294901760, %v320_v60  ;;  %v334_v17 = vsub.f32 %v2992_v51, %v333_v62 }
  0x66   : > { %2261 = vmatpush3.bf16.msra.mxu0 %v2966_v29  ;;  %2405 = vmatpush3.bf16.msra.mxu1 %v2966_v29  ;;  %v347_v20 = vand.u32 4294901760, %v3010_v58  ;;  %v944_v21 = vsub.f32 %v2995_v52, %v3344_v63  ;;  %v354_v22 = vand.u32 4294901760, %v3024_v2  ;;  %v361_v23 = vand.u32 4294901760, %v3027_v3 }
  0x67   : > { %2262 = vmatprep.subr.bf16.mxu0 %v2756_v0  ;;  %2406 = vmatprep.subr.bf16.mxu1 %v2756_v0  ;;  %v368_v25 = vand.u32 4294901760, %v3029_v4  ;;  %v375_v26 = vand.u32 4294901760, %v3031_v5  ;;  %v382_v27 = vand.u32 4294901760, %v3033_v6  ;;  %v389_v28 = vand.u32 4294901760, %v3035_v7 }
  0x68   : > { %v396_v30 = vand.u32 4294901760, %v3037_v8  ;;  %v403_v31 = vand.u32 4294901760, %v3042_v10  ;;  %v410_v32 = vand.u32 4294901760, %v3044_v11  ;;  %v3346_v33 = vand.u32 4294901760, %v3046_v14 }
  0x69   : > { %v3067_v34 = vpack.c.bf16 %v319_v49, %v312_v47  ;;  %v3071_v39 = vpack.c.bf16 %v333_v62, %v326_v50  ;;  %v3073_v40 = vpack.c.bf16 %v347_v20, %v340_v9  ;;  %v3075_v42 = vpack.c.bf16 %v361_v23, %v354_v22 }
  0x6a   : > { %2264 = vmatpush3.bf16.msra.mxu0 %v2984_v46  ;;  %2408 = vmatpush3.bf16.msra.mxu1 %v2984_v46  ;;  %v3077_v43 = vpack.c.bf16 %v375_v26, %v368_v25  ;;  %v3079_v44 = vpack.c.bf16 %v389_v28, %v382_v27  ;;  %v3081_v45 = vpack.c.bf16 %v403_v31, %v396_v30  ;;  %v303_v49 = vand.u32 4294901760, %v302_v59 }
  0x6b   : > { %2265 = vmatprep.subr.bf16.mxu0 %v2756_v0  ;;  %2409 = vmatprep.subr.bf16.mxu1 %v2756_v0  ;;  %v3087_v47 = vpack.c.bf16 %v3346_v33, %v410_v32  ;;  %v945_v56 = vand.u32 4294901760, %v944_v21  ;;  %v341_v50 = vsub.f32 %v3007_v57, %v340_v9  ;;  %v348_v60 = vsub.f32 %v3010_v58, %v347_v20 }
  0x6c   : > { %v2275_v62 = vpack.c.bf16 %v321_v16, %v314_v15  ;;  %v328_v63 = vand.u32 4294901760, %v3019_v61  ;;  %v335_v48 = vand.u32 4294901760, %v334_v17  ;;  %v355_v20 = vsub.f32 %v3024_v2, %v354_v22 }
  0x6d   : > { %v342_v59 = vand.u32 4294901760, %v341_v50  ;;  %v349_v21 = vand.u32 4294901760, %v348_v60  ;;  %v362_v33 = vsub.f32 %v3027_v3, %v361_v23  ;;  %v383_v17 = vsub.f32 %v3033_v6, %v382_v27 }
  0x6e   : > { %2267 = vmatpush3.bf16.msra.mxu0 %v2997_v53  ;;  %2411 = vmatpush3.bf16.msra.mxu1 %v2997_v53  ;;  %v2278_v9 = vpack.c.bf16 %v335_v48, %v328_v63  ;;  %v356_v15 = vand.u32 4294901760, %v355_v20  ;;  %v369_v48 = vsub.f32 %v3029_v4, %v368_v25  ;;  %v376_v63 = vsub.f32 %v3031_v5, %v375_v26 }
  0x6f   : > { %2268 = vmatprep.subr.bf16.mxu0 %v2756_v0  ;;  %2412 = vmatprep.subr.bf16.mxu1 %v2756_v0  ;;  %v2281_v61 = vpack.c.bf16 %v349_v21, %v342_v59  ;;  %v363_v16 = vand.u32 4294901760, %v362_v33  ;;  %v397_v25 = vsub.f32 %v3037_v8, %v396_v30  ;;  %v384_v33 = vand.u32 4294901760, %v383_v17 }
  0x70   : > { %v370_v23 = vand.u32 4294901760, %v369_v48  ;;  %v404_v27 = vsub.f32 %v3042_v10, %v403_v31  ;;  %v411_v30 = vsub.f32 %v3044_v11, %v410_v32  ;;  %v3358_v59 = vand.u32 4294901760, %v3046_v14 }
  0x71   : > { %v2284_v22 = vpack.c.bf16 %v363_v16, %v356_v15  ;;  %v398_v60 = vand.u32 4294901760, %v397_v25  ;;  %v2302_v15 = vpack.c.bf16 %v2992_v51, %v2978_v38  ;;  %v2311_v38 = vpack.c.bf16 %v3031_v5, %v3029_v4 }
  0x72   : > { %2270 = vmatpush3.bf16.msra.mxu0 %v2999_v54  ;;  %2414 = vmatpush3.bf16.msra.mxu1 %v2999_v54  ;;  %v418_v21 = vsub.f32 %v3046_v14, %v3358_v59  ;;  %v2314_v51 = vpack.c.bf16 %v3035_v7, %v3033_v6 }
  0x73   : > { %2271 = vmatprep.subr.bf16.mxu0 %v2756_v0  ;;  %2415 = vmatprep.subr.bf16.mxu1 %v2756_v0 }
  0x74   : > { %v419_v20 = vand.u32 4294901760, %v418_v21 }
  0x76   : > { %2273 = vmatpush3.bf16.msra.mxu0 %v3001_v55  ;;  %2417 = vmatpush3.bf16.msra.mxu1 %v3001_v55 }
  0x77   : > { %2274 = vmatprep.subr.bf16.mxu0 %v2756_v0  ;;  %2418 = vmatprep.subr.bf16.mxu1 %v2756_v0 }
  0x79   : > { %1863 = vmatmul.mubr.f32.vlgmr.msra.gmra.mrb[0].mxu0 %v303_v49  ;;  %2073 = vmatmul.mubr.f32.vlgmr.msra.gmra.mrb[0].mxu1 %v945_v56  ;;  %v377_v49 = vand.u32 4294901760, %v376_v63  ;;  %v390_v56 = vsub.f32 %v3035_v7, %v389_v28 }
  0x7a   : > { %2276 = vmatpush3.bf16.msra.mxu0 %v2275_v62  ;;  %2420 = vmatpush3.bf16.msra.mxu1 %v2275_v62  ;;  %v405_v62 = vand.u32 4294901760, %v404_v27 }
  0x7b   : > { %2277 = vmatprep.subr.bf16.mxu0 %v2756_v0  ;;  %2421 = vmatprep.subr.bf16.mxu1 %v2756_v0  ;;  %v2287_v26 = vpack.c.bf16 %v377_v49, %v370_v23  ;;  %v391_v50 = vand.u32 4294901760, %v390_v56 }
  0x7c   : > { %1897 = vmatprep.mubr.msk.f32.mxu0 %vm2757_vm0, %v2758_v1  ;;  %2107 = vmatprep.mubr.msk.f32.mxu1 %vm2757_vm0, %v2758_v1  ;;  %v2293_v31 = vpack.c.bf16 %v405_v62, %v398_v60 }
  0x7d   : > { %v2290_v28 = vpack.c.bf16 %v391_v50, %v384_v33 }
  0x7e   : > { %2279 = vmatpush3.bf16.msra.mxu0 %v2278_v9  ;;  %2423 = vmatpush3.bf16.msra.mxu1 %v2278_v9  ;;  %v412_v9 = vand.u32 4294901760, %v411_v30 }
  0x7f   : > { %2280 = vmatprep.subr.bf16.mxu0 %v2756_v0  ;;  %2424 = vmatprep.subr.bf16.mxu1 %v2756_v0 }
  0x80   : > { %v2296_v32 = vpack.c.bf16 %v419_v20, %v412_v9 }
  0x82   : > { %2282 = vmatpush3.bf16.msra.mxu0 %v2281_v61  ;;  %2426 = vmatpush3.bf16.msra.mxu1 %v2281_v61  ;;  %v2299_v61 = vpack.c.bf16 %v2976_v37, %v2968_v35  ;;  %v2305_v35 = vpack.c.bf16 %v3010_v58, %v3007_v57  ;;  %v2308_v37 = vpack.c.bf16 %v3027_v3, %v3024_v2  ;;  %v3359_v2 = vand.u32 4294901760, %v2974_v36 }
  0x83   : > { %2283 = vmatprep.subr.bf16.mxu0 %v2756_v0  ;;  %2427 = vmatprep.subr.bf16.mxu1 %v2756_v0  ;;  %v2317_v57 = vpack.c.bf16 %v3042_v10, %v3037_v8  ;;  %v2320_v58 = vpack.c.bf16 %v3046_v14, %v3044_v11  ;;  %v3360_v3 = vand.u32 4294901760, %v2995_v52 }
  0x86   : > { %2285 = vmatpush3.bf16.msra.mxu0 %v2284_v22  ;;  %2429 = vmatpush3.bf16.msra.mxu1 %v2284_v22 }
  0x87   : > { %2286 = vmatprep.subr.bf16.mxu0 %v2756_v0  ;;  %2430 = vmatprep.subr.bf16.mxu1 %v2756_v0 }
  0x8a   : > { %2288 = vmatpush3.bf16.msra.mxu0 %v2287_v26  ;;  %2432 = vmatpush3.bf16.msra.mxu1 %v2287_v26 }
  0x8b   : > { %2289 = vmatprep.subr.bf16.mxu0 %v2756_v0  ;;  %2433 = vmatprep.subr.bf16.mxu1 %v2756_v0 }
  0x8e   : > { %2291 = vmatpush3.bf16.msra.mxu0 %v2290_v28  ;;  %2435 = vmatpush3.bf16.msra.mxu1 %v2290_v28 }
  0x8f   : > { %2292 = vmatprep.subr.bf16.mxu0 %v2756_v0  ;;  %2436 = vmatprep.subr.bf16.mxu1 %v2756_v0 }
  0x92   : > { %2294 = vmatpush3.bf16.msra.mxu0 %v2293_v31  ;;  %2438 = vmatpush3.bf16.msra.mxu1 %v2293_v31 }
  0x93   : > { %2295 = vmatprep.subr.bf16.mxu0 %v2756_v0  ;;  %2439 = vmatprep.subr.bf16.mxu1 %v2756_v0 }
  0x96   : > { %2297 = vmatpush3.bf16.msra.mxu0 %v2296_v32  ;;  %2441 = vmatpush3.bf16.msra.mxu1 %v2296_v32 }
  0x97   : > { %2298 = vmatprep.subr.bf16.mxu0 %v2756_v0  ;;  %2442 = vmatprep.subr.bf16.mxu1 %v2756_v0 }
  0x99   : > { %1898 = vmatmul.mubr.f32.vlgmr.msra.gmra.mrb[0].mxu0 %v2960_v24  ;;  %2108 = vmatmul.mubr.f32.vlgmr.msra.gmra.mrb[0].mxu1 %v2980_v41 }
  0x9a   : > { %2300 = vmatpush3.bf16.msra.mxu0 %v2299_v61  ;;  %2444 = vmatpush3.bf16.msra.mxu1 %v2299_v61 }
  0x9b   : > { %2301 = vmatprep.subr.bf16.mxu0 %v2756_v0  ;;  %2445 = vmatprep.subr.bf16.mxu1 %v2756_v0 }
  0x9c   : > { %1932 = vmatprep.mubr.msk.f32.mxu0 %vm2757_vm0, %v2758_v1  ;;  %2142 = vmatprep.mubr.msk.f32.mxu1 %vm2757_vm0, %v2758_v1 }
  0x9e   : > { %2303 = vmatpush3.bf16.msra.mxu0 %v2302_v15  ;;  %2447 = vmatpush3.bf16.msra.mxu1 %v2302_v15 }
  0x9f   : > { %2304 = vmatprep.subr.bf16.mxu0 %v2756_v0  ;;  %2448 = vmatprep.subr.bf16.mxu1 %v2756_v0 }
  0xa2   : > { %2306 = vmatpush3.bf16.msra.mxu0 %v2305_v35  ;;  %2450 = vmatpush3.bf16.msra.mxu1 %v2305_v35 }
  0xa3   : > { %2307 = vmatprep.subr.bf16.mxu0 %v2756_v0  ;;  %2451 = vmatprep.subr.bf16.mxu1 %v2756_v0 }
  0xa6   : > { %2309 = vmatpush3.bf16.msra.mxu0 %v2308_v37  ;;  %2453 = vmatpush3.bf16.msra.mxu1 %v2308_v37 }
  0xa7   : > { %2310 = vmatprep.subr.bf16.mxu0 %v2756_v0  ;;  %2454 = vmatprep.subr.bf16.mxu1 %v2756_v0 }
  0xaa   : > { %2312 = vmatpush3.bf16.msra.mxu0 %v2311_v38  ;;  %2456 = vmatpush3.bf16.msra.mxu1 %v2311_v38 }
  0xab   : > { %2313 = vmatprep.subr.bf16.mxu0 %v2756_v0  ;;  %2457 = vmatprep.subr.bf16.mxu1 %v2756_v0 }
  0xae   : > { %2315 = vmatpush3.bf16.msra.mxu0 %v2314_v51  ;;  %2459 = vmatpush3.bf16.msra.mxu1 %v2314_v51 }
  0xaf   : > { %2316 = vmatprep.subr.bf16.mxu0 %v2756_v0  ;;  %2460 = vmatprep.subr.bf16.mxu1 %v2756_v0 }
  0xb2   : > { %2318 = vmatpush3.bf16.msra.mxu0 %v2317_v57  ;;  %2462 = vmatpush3.bf16.msra.mxu1 %v2317_v57 }
  0xb3   : > { %2319 = vmatprep.subr.bf16.mxu0 %v2756_v0  ;;  %2463 = vmatprep.subr.bf16.mxu1 %v2756_v0 }
  0xb6   : > { %2321 = vmatpush3.bf16.msra.mxu0 %v2320_v58  ;;  %2465 = vmatpush3.bf16.msra.mxu1 %v2320_v58 }
  0xb7   : > { %2322 = vmatprep.subr.bf16.mxu0 %v2756_v0  ;;  %2466 = vmatprep.subr.bf16.mxu1 %v2756_v0 }
  0xb9   : > { %1933 = vmatmul.mubr.f32.vlgmr.msra.gmra.mrb[0].mxu0 %v2974_v36  ;;  %2143 = vmatmul.mubr.f32.vlgmr.msra.gmra.mrb[0].mxu1 %v2995_v52 }
  0xba   : > { %2324 = vmatpush3.bf16.msra.mxu0 %v2934_v12  ;;  %2468 = vmatpush3.bf16.msra.mxu1 %v2934_v12 }
  0xbb   : > { %2325 = vmatprep.subr.bf16.mxu0 %v2756_v0  ;;  %2469 = vmatprep.subr.bf16.mxu1 %v2756_v0 }
  0xbc   : > { %1967 = vmatprep.mubr.msk.f32.mxu0 %vm2757_vm0, %v2758_v1  ;;  %2177 = vmatprep.mubr.msk.f32.mxu1 %vm2757_vm0, %v2758_v1 }
  0xbe   : > { %2327 = vmatpush3.bf16.msra.mxu0 %v2938_v13  ;;  %2471 = vmatpush3.bf16.msra.mxu1 %v2938_v13 }
  0xbf   : > { %2328 = vmatprep.subr.bf16.mxu0 %v2756_v0  ;;  %2472 = vmatprep.subr.bf16.mxu1 %v2756_v0 }
  0xc2   : > { %2330 = vmatpush3.bf16.msra.mxu0 %v2953_v19  ;;  %2474 = vmatpush3.bf16.msra.mxu1 %v2953_v19 }
  0xc3   : > { %2331 = vmatprep.subr.bf16.mxu0 %v2756_v0  ;;  %2475 = vmatprep.subr.bf16.mxu1 %v2756_v0 }
  0xc6   : > { %2333 = vmatpush3.bf16.msra.mxu0 %v2966_v29  ;;  %2477 = vmatpush3.bf16.msra.mxu1 %v2966_v29 }
  0xc7   : > { %2334 = vmatprep.subr.bf16.mxu0 %v2756_v0  ;;  %2478 = vmatprep.subr.bf16.mxu1 %v2756_v0 }
  0xca   : > { %2336 = vmatpush3.bf16.msra.mxu0 %v2984_v46  ;;  %2480 = vmatpush3.bf16.msra.mxu1 %v2984_v46 }
  0xcb   : > { %2337 = vmatprep.subr.bf16.mxu0 %v2756_v0  ;;  %2481 = vmatprep.subr.bf16.mxu1 %v2756_v0 }
  0xce   : > { %2339 = vmatpush3.bf16.msra.mxu0 %v2997_v53  ;;  %2483 = vmatpush3.bf16.msra.mxu1 %v2997_v53 }
  0xcf   : > { %2340 = vmatprep.subr.bf16.mxu0 %v2756_v0  ;;  %2484 = vmatprep.subr.bf16.mxu1 %v2756_v0 }
  0xd2   : > { %2342 = vmatpush3.bf16.msra.mxu0 %v2999_v54  ;;  %2486 = vmatpush3.bf16.msra.mxu1 %v2999_v54 }
  0xd3   : > { %2343 = vmatprep.subr.bf16.mxu0 %v2756_v0  ;;  %2487 = vmatprep.subr.bf16.mxu1 %v2756_v0 }
  0xd6   : > { %2345 = vmatpush3.bf16.msra.mxu0 %v3001_v55  ;;  %2489 = vmatpush3.bf16.msra.mxu1 %v3001_v55 }
  0xd7   : > { %2346 = vmatprep.subr.bf16.mxu0 %v2756_v0  ;;  %2490 = vmatprep.subr.bf16.mxu1 %v2756_v0 }
  0xd9   : > { %1968 = vmatmul.mubr.f32.vlgmr.msra.gmra.mrb[0].mxu0 %v3359_v2  ;;  %2178 = vmatmul.mubr.f32.vlgmr.msra.gmra.mrb[0].mxu1 %v3360_v3 }
  0xda   : > { %2348 = vmatpush3.bf16.msra.mxu0 %v3067_v34  ;;  %2492 = vmatpush3.bf16.msra.mxu1 %v3067_v34 }
  0xdb   : > { %2349 = vmatprep.subr.bf16.mxu0 %v2756_v0  ;;  %2493 = vmatprep.subr.bf16.mxu1 %v2756_v0 }
  0xdc   : > { %2002 = vmatprep.mubr.msk.f32.mxu0 %vm2757_vm0, %v2758_v1  ;;  %2212 = vmatprep.mubr.msk.f32.mxu1 %vm2757_vm0, %v2758_v1 }
  0xde   : > { %2351 = vmatpush3.bf16.msra.mxu0 %v3071_v39  ;;  %2495 = vmatpush3.bf16.msra.mxu1 %v3071_v39 }
  0xdf   : > { %2352 = vmatprep.subr.bf16.mxu0 %v2756_v0  ;;  %2496 = vmatprep.subr.bf16.mxu1 %v2756_v0 }
  0xe2   : > { %2354 = vmatpush3.bf16.msra.mxu0 %v3073_v40  ;;  %2498 = vmatpush3.bf16.msra.mxu1 %v3073_v40 }
  0xe3   : > { %2355 = vmatprep.subr.bf16.mxu0 %v2756_v0  ;;  %2499 = vmatprep.subr.bf16.mxu1 %v2756_v0 }
  0xe6   : > { %2357 = vmatpush3.bf16.msra.mxu0 %v3075_v42  ;;  %2501 = vmatpush3.bf16.msra.mxu1 %v3075_v42 }
  0xe7   : > { %2358 = vmatprep.subr.bf16.mxu0 %v2756_v0  ;;  %2502 = vmatprep.subr.bf16.mxu1 %v2756_v0 }
  0xea   : > { %2360 = vmatpush3.bf16.msra.mxu0 %v3077_v43  ;;  %2504 = vmatpush3.bf16.msra.mxu1 %v3077_v43 }
  0xeb   : > { %2361 = vmatprep.subr.bf16.mxu0 %v2756_v0  ;;  %2505 = vmatprep.subr.bf16.mxu1 %v2756_v0 }
  0xee   : > { %2363 = vmatpush3.bf16.msra.mxu0 %v3079_v44  ;;  %2507 = vmatpush3.bf16.msra.mxu1 %v3079_v44 }
  0xef   : > { %2364 = vmatprep.subr.bf16.mxu0 %v2756_v0  ;;  %2508 = vmatprep.subr.bf16.mxu1 %v2756_v0 }
  0xf2   : > { %2366 = vmatpush3.bf16.msra.mxu0 %v3081_v45  ;;  %2510 = vmatpush3.bf16.msra.mxu1 %v3081_v45 }
  0xf3   : > { %2367 = vmatprep.subr.bf16.mxu0 %v2756_v0  ;;  %2511 = vmatprep.subr.bf16.mxu1 %v2756_v0 }
  0xf6   : > { %2369 = vmatpush3.bf16.msra.mxu0 %v3087_v47  ;;  %2513 = vmatpush3.bf16.msra.mxu1 %v3087_v47 }
  0xf7   : > { %2370 = vmatprep.subr.bf16.mxu0 %v2756_v0  ;;  %2514 = vmatprep.subr.bf16.mxu1 %v2756_v0 }
  0xf9   : > { %2003 = vmatmul.mubr.f32.vlgmr.msra.gmra.mrb[0].mxu0 %v2960_v24  ;;  %2213 = vmatmul.mubr.f32.vlgmr.msra.gmra.mrb[0].mxu1 %v2980_v41 }
  0xfa   : > { %2372 = vmatpush3.bf16.msra.mxu0 %v2934_v12  ;;  %2516 = vmatpush3.bf16.msra.mxu1 %v2934_v12 }
  0xfb   : > { %2373 = vmatprep.subr.bf16.mxu0 %v2756_v0  ;;  %2517 = vmatprep.subr.bf16.mxu1 %v2756_v0 }
  0xfc   : > { %2037 = vmatprep.mubr.msk.f32.mxu0 %vm2757_vm0, %v2758_v1  ;;  %2247 = vmatprep.mubr.msk.f32.mxu1 %vm2757_vm0, %v2758_v1 }
  0xfe   : > { %2375 = vmatpush3.bf16.msra.mxu0 %v2938_v13  ;;  %2519 = vmatpush3.bf16.msra.mxu1 %v2938_v13 }
  0xff   : > { %2376 = vmatprep.subr.bf16.mxu0 %v2756_v0  ;;  %2520 = vmatprep.subr.bf16.mxu1 %v2756_v0 }
 0x102   : > { %2378 = vmatpush3.bf16.msra.mxu0 %v2953_v19  ;;  %2522 = vmatpush3.bf16.msra.mxu1 %v2953_v19 }
 0x103   : > { %2379 = vmatprep.subr.bf16.mxu0 %v2756_v0  ;;  %2523 = vmatprep.subr.bf16.mxu1 %v2756_v0 }
 0x106   : > { %2381 = vmatpush3.bf16.msra.mxu0 %v2966_v29  ;;  %2525 = vmatpush3.bf16.msra.mxu1 %v2966_v29 }
 0x107   : > { %2382 = vmatprep.subr.bf16.mxu0 %v2756_v0  ;;  %2526 = vmatprep.subr.bf16.mxu1 %v2756_v0 }
 0x10a   : > { %2384 = vmatpush3.bf16.msra.mxu0 %v2984_v46  ;;  %2528 = vmatpush3.bf16.msra.mxu1 %v2984_v46 }
 0x10b   : > { %2385 = vmatprep.subr.bf16.mxu0 %v2756_v0  ;;  %2529 = vmatprep.subr.bf16.mxu1 %v2756_v0 }
 0x10e   : > { %2387 = vmatpush3.bf16.msra.mxu0 %v2997_v53  ;;  %2531 = vmatpush3.bf16.msra.mxu1 %v2997_v53 }
 0x10f   : > { %2388 = vmatprep.subr.bf16.mxu0 %v2756_v0  ;;  %2532 = vmatprep.subr.bf16.mxu1 %v2756_v0 }
 0x112   : > { %2390 = vmatpush3.bf16.msra.mxu0 %v2999_v54  ;;  %2534 = vmatpush3.bf16.msra.mxu1 %v2999_v54  ;;  %v1621_v54 = vld [vmem:[%s3338_s1] ss:$0 sm:$0xff] }
 0x113   : > { %2391 = vmatprep.subr.bf16.mxu0 %v2756_v0  ;;  %2535 = vmatprep.subr.bf16.mxu1 %v2756_v0 }
 0x116   : > { %2393 = vmatpush3.bf16.msra.mxu0 %v3001_v55  ;;  %2537 = vmatpush3.bf16.msra.mxu1 %v3001_v55 }
 0x119   : > { %2038 = vmatmul.mubr.f32.vlgmr.msra.gmra.mrb[0].mxu0 %v2960_v24  ;;  %2248 = vmatmul.mubr.f32.vlgmr.msra.gmra.mrb[0].mxu1 %v2980_v41 }
 0x1ec   : > { %v855_v1 = vpop.f32.mrb[0].mxu0  ;;  %v1497_v12 = vpop.f32.mrb[0].mxu1 }
 0x1ed   : > { %v1501_v13 = vmul.f32 0.03125, %v855_v1  ;;  %v2039_v19 = vpop.f32.mrb[1].mxu0  ;;  %v2249_v29 = vpop.f32.mrb[1].mxu1  ;;  %v1502_v46 = vmul.f32 0.03125, %v1497_v12 }
 0x1ef   : > { %v1503_v36 = vmul.f32 %v1501_v13, %v1501_v13 }
 0x1f1   : > { %v1504_v52 = vsub.f32 %v1502_v46, %v1503_v36 }
 0x1f3   : > { %v1505_v0 = vadd.f32 1e-05, %v1504_v52 }
 0x1f5   : > { %2620 = vrsqrt.f32 %v1505_v0 }
 0x1ff   : > { %v2621_v53 = vpop.eup %2620 }
 0x200   : > { %v1507_v24 = vmul.f32 %v2621_v53, %v2949_v18 }
 0x202   : > { %v1515_v41 = vmul.f32 %v1621_v54, %v1507_v24 }
 0x204   : > { %1516 = vst [vmem:[%s200_s25] sm:$0xff] %v1515_v41 }
 0x205   : > { %2693 = shalt.err (!%p2690_p7)
}
 0x206   : > { %s2694_s29 = scalar_lea.hbm %s3294_s9, 128  ;;  %s2698_s22 = scalar_lea.hbm %s3340_s3, 512 }
 0x207   : > { %p2695_p9 = scmp.ne.s32.totalorder %s3294_s9, %s2694_s29  ;;  %p2699_p0 = scmp.lt.u32.totalorder %s3294_s9, %s3340_s3 }
 0x208   : > { %p2700_p10 = scmp.lt.u32.totalorder %s2698_s22, %s2694_s29  ;;  %p2702_p1 = scmp.lt.u32.totalorder %s2694_s29, %s3294_s9 }
 0x209   : > { %p2696_p11 = pnand %p2695_p9, %p2863_p12 }
 0x20a   : > { %p2701_p2 = por %p2700_p10, %p2699_p0 }
 0x20b   : > { %p2697_p5 = pneg %p2696_p11 }
 0x20c   : > { %p2703_p4 = por %p2702_p1, %p2701_p2 }
 0x20e   : > { %p2704_p6 = pnand %p2703_p4, %p2697_p5 }
 0x210   : > { %2707 = shalt.err (!%p2704_p6)
}
 0x211   : > { %2564 = dma.vmem_to_hbm [thread:$0]  (%p2863_p12), %s3296_s26, 128, %s3294_s9, %s1518_s10  }
 0x212 PF: > { %p2581_p8 = scmp.ge.s32.totalorder %s2750_s15, 2  ;;  %s1543_s18 = sand.u32 1, %s2738_s12  }
 0x213   : > { %p3361_p13 = scmp.ne.s32.totalorder %s3348_s19, 0  ;;  %s1544_s20 = scalar_lea.sflag [#allocation4], %s1543_s18 }
 0x215   : > { %p2575_p3 = pnand %p2581_p8, %p3361_p13 }
 0x217   : > { %2733 = dma.done.wait (!%p2575_p3), %s1544_s20, 128  }
 0x218   : > { %2735 = vsyncadd (!%p2575_p3), %s1544_s20, 4294967168  ;;  %p17_p7 = scmp.ge.s32.totalorder %s2833_s24, 6   ;;  %s3362_s12 = smov %s2742_s13 }
 0x219   : > { %s3363_s13 = smov %s2746_s14  ;;  %s3364_s14 = smov %s2859_s17 }
 0x21a   : > { %s3365_s15 = smov %s2833_s24  ;;  %19 = sbr.rel (!%p17_p7) target bundleno = 6 (0x6), region = 81 }
 0x221   :  { %1549 = vsyncpa [#allocation3], 1 }
 0x222   :  { %1551 = vsyncpa [#allocation3 + $0x1], 1 }
 0x223   :  { %1552 = vsyncpa [#allocation6], 1 }
 0x224   :  { %1553 = vsyncpa [#allocation4], 1 }
 0x225   :  { %1555 = vsyncpa [#allocation4 + $0x1], 1 }

// kernel: tpu_custom_call.1
= control target key start
LH: loop header
LB: loop body
LE: loop exit
PB: predicated region body
PF: predicated region fallthrough
CT: control target
= control target key end

     0   :  { %s331_s9 = smov 0   ;;  %s382_s0 = inlined_call_operand.vmem [shape: f32[128,32], index: 0, kind: input, shape index: {}]   ;;  %s383_s1 = inlined_call_operand.vmem [shape: f32[1,32], index: 1, kind: input, shape index: {}]   ;;  %s384_s2 = inlined_call_operand.vmem [shape: f32[128,32], index: 2, kind: output, shape index: {}]  }
   0x1 LB: > { %s280_s10 = sadd.s32 4294967295, %s314_s9   ;;  %p284_p0 = scmp.ge.s32.totalorder %s314_s9, 1  ;;  %s314_s9 = sphi %s331_s9, %s12_s9  }
   0x2   : > { %p113_p1 = scmp.lt.s32.totalorder %s314_s9, 5 }
   0x4   : > { %p114_p2 = pnand %p284_p0, %p113_p1 }
   0x5   : > { %s285_s11 = sshll.u32 (!%p114_p2), %s280_s10, 2  ;;  %vm151_vm0 = vcmask (!%p114_p2), 261120   ;;  %v289_v45 = vld [vmem:[%s383_s1] ss:$0 sm:$0xff] (!%p114_p2) }
   0x6   : > { %117 = sbr.rel (%p114_p2) target bundleno = 195 (0xc3), region = 28  ;;  %p136_p3 = scmp.lt.s32.totalorder (!%p114_p2), %s285_s11, 15 }
   0xd   : > { %s386_s11 = smov (!%p136_p3, %s285_s11), 15 }
   0xe   : > { %s286_s12 = sshll.u32 %s386_s11, 3 }
   0xf   : > { %s139_s15 = scalar_lea.vmem %s382_s0, %s286_s12  ;;  %s145_s20 = scalar_lea.vmem %s384_s2, %s286_s12 }
  0x10   : > { %v347_v0 = vld [vmem:[%s139_s15 + $0x10] sm:$0xff]  ;;  %v147_v1 = vld [vmem:[%s139_s15] sm:$0xff]  ;;  %v349_v2 = vld [vmem:[%s139_s15 + $0x18] sm:$0xff] }
  0x11   : > { %v158_v3 = vsel %vm151_vm0, %v347_v0, 0.0  ;;  %v152_v4 = vsel %vm151_vm0, %v147_v1, 0.0  ;;  %v148_v5 = vld [vmem:[%s139_s15 + $0x8] sm:$0xff]  ;;  %v161_v6 = vsel %vm151_vm0, %v349_v2, 0.0  ;;  %v169_v9 = vmul.f32 %v147_v1, %v147_v1 }
  0x12   : > { %159 = vadd.xlane.f32.xlu1 %v158_v3  ;;  %153 = vadd.xlane.f32.xlu0 %v152_v4  ;;  %v155_v7 = vsel %vm151_vm0, %v148_v5, 0.0  ;;  %v170_v8 = vmul.f32 %v148_v5, %v148_v5  ;;  %v172_v12 = vmul.f32 %v349_v2, %v349_v2  ;;  %v171_v13 = vmul.f32 %v347_v0, %v347_v0 }
  0x13   : > { %v173_v11 = vsel %vm151_vm0, %v169_v9, 0.0 }
  0x14   : > { %v176_v10 = vsel %vm151_vm0, %v170_v8, 0.0  ;;  %v182_v14 = vsel %vm151_vm0, %v172_v12, 0.0  ;;  %v179_v15 = vsel %vm151_vm0, %v171_v13, 0.0 }
  0x16   : > { %162 = vadd.xlane.f32.xlu1 %v161_v6  ;;  %156 = vadd.xlane.f32.xlu0 %v155_v7 }
  0x1a   : > { %177 = vadd.xlane.f32.xlu1 %v176_v10  ;;  %174 = vadd.xlane.f32.xlu0 %v173_v11 }
  0x1e   : > { %183 = vadd.xlane.f32.xlu1 %v182_v14  ;;  %180 = vadd.xlane.f32.xlu0 %v179_v15 }
  0x9f   : > { %v160_v16 = vpop.xlane.xlu1 %159  ;;  %v154_v17 = vpop.xlane.xlu0 %153 }
  0xa0   : > { %v165_v20 = vmul.f32 0.03125, %v154_v17  ;;  %v167_v22 = vmul.f32 0.03125, %v160_v16 }
  0xa2   : > { %v189_v26 = vmul.f32 %v165_v20, %v165_v20  ;;  %v191_v32 = vmul.f32 %v167_v22, %v167_v22 }
  0xa3   : > { %v163_v18 = vpop.xlane.xlu1 %162  ;;  %v157_v19 = vpop.xlane.xlu0 %156 }
  0xa4   : > { %v166_v21 = vmul.f32 0.03125, %v157_v19  ;;  %v168_v23 = vmul.f32 0.03125, %v163_v18 }
  0xa6   : > { %v190_v27 = vmul.f32 %v166_v21, %v166_v21  ;;  %v192_v33 = vmul.f32 %v168_v23, %v168_v23 }
  0xa7   : > { %v178_v24 = vpop.xlane.xlu1 %177  ;;  %v175_v25 = vpop.xlane.xlu0 %174 }
  0xa8   : > { %v186_v28 = vmul.f32 0.03125, %v178_v24  ;;  %v185_v29 = vmul.f32 0.03125, %v175_v25 }
  0xaa   : > { %v194_v30 = vsub.f32 %v186_v28, %v190_v27  ;;  %v193_v31 = vsub.f32 %v185_v29, %v189_v26 }
  0xab   : > { %v184_v34 = vpop.xlane.xlu1 %183  ;;  %v181_v35 = vpop.xlane.xlu0 %180 }
  0xac   : > { %v198_v36 = vadd.f32 1e-05, %v194_v30  ;;  %v197_v37 = vadd.f32 1e-05, %v193_v31  ;;  %v188_v38 = vmul.f32 0.03125, %v184_v34  ;;  %v187_v39 = vmul.f32 0.03125, %v181_v35 }
  0xae   : > { %300 = vrsqrt.f32 %v198_v36  ;;  %v196_v40 = vsub.f32 %v188_v38, %v192_v33  ;;  %v195_v41 = vsub.f32 %v187_v39, %v191_v32 }
  0xaf   : > { %302 = vrsqrt.f32 %v197_v37 }
  0xb0   : > { %v200_v42 = vadd.f32 1e-05, %v196_v40  ;;  %v199_v43 = vadd.f32 1e-05, %v195_v41 }
  0xb2   : > { %304 = vrsqrt.f32 %v200_v42 }
  0xb3   : > { %306 = vrsqrt.f32 %v199_v43 }
  0xb8   : > { %v301_v44 = vpop.eup %300 }
  0xb9   : > { %v303_v46 = vpop.eup %302  ;;  %v206_v47 = vmul.f32 %v301_v44, %v148_v5 }
  0xba   : > { %v205_v48 = vmul.f32 %v303_v46, %v147_v1 }
  0xbb   : > { %v217_v49 = vmul.f32 %v289_v45, %v206_v47 }
  0xbc   : > { %v305_v50 = vpop.eup %304  ;;  %v216_v51 = vmul.f32 %v289_v45, %v205_v48 }
  0xbd   : > { %v307_v52 = vpop.eup %306  ;;  %221 = vst.msk [vmem:[%s145_s20 + $0x8] sm:$0xff] %vm151_vm0, %v217_v49  ;;  %v208_v53 = vmul.f32 %v305_v50, %v349_v2 }
  0xbe   : > { %220 = vst.msk [vmem:[%s145_s20] sm:$0xff] %vm151_vm0, %v216_v51  ;;  %v207_v54 = vmul.f32 %v307_v52, %v347_v0 }
  0xbf   : > { %v219_v55 = vmul.f32 %v289_v45, %v208_v53 }
  0xc0   : > { %v218_v56 = vmul.f32 %v289_v45, %v207_v54 }
  0xc1   : > { %223 = vst.msk [vmem:[%s145_s20 + $0x18] sm:$0xff] %vm151_vm0, %v219_v55 }
  0xc2   : > { %222 = vst.msk [vmem:[%s145_s20 + $0x10] sm:$0xff] %vm151_vm0, %v218_v56 }
  0xc3 PF: > { %s12_s9 = sadd.s32 1, %s314_s9  }
  0xc4   : > { %p9_p4 = scmp.ge.s32.totalorder %s12_s9, 6  }
  0xc6   :  { %11 = sbr.rel (!%p9_p4) target bundleno = 1 (0x1), region = 58 }

</bundles_post_ra>
